<compile_context>
chip_gen: v6e
topology: v6e:2x2x1
jax: 0.10.0
libtpu: 0.0.40
codegen_flags: <defaults>
</compile_context>

<pallas_src>
import jax
import jax.numpy as jnp
from jax.experimental import pallas as pl
from jax.experimental.pallas import tpu as pltpu


def _round_up(x, m):
    return ((x + m - 1) // m) * m


def _make_basic_block_kernel(*, use_norm, activation, n_valid, nk, eps=1e-5):
    """K-tiled dense -> (masked LayerNorm) -> activation on one row tile.

    Ref order: x, wt, b, [gamma, beta,] out, acc_scratch.
    """

    def kernel(*refs):
        if use_norm:
            x_ref, wt_ref, b_ref, gamma_ref, beta_ref, o_ref, acc_ref = refs
        else:
            x_ref, wt_ref, b_ref, o_ref, acc_ref = refs
            gamma_ref = beta_ref = None

        k = pl.program_id(1)

        @pl.when(k == 0)
        def _init():
            acc_ref[...] = jnp.zeros_like(acc_ref)

        # MXU matmul, f32 accumulation (operands may be bf16).
        acc_ref[...] += jnp.dot(x_ref[...], wt_ref[...],
                                preferred_element_type=jnp.float32)

        @pl.when(k == nk - 1)
        def _finalize():
            y = acc_ref[...] + b_ref[...]            # (tm, dout_p) f32

            if use_norm:
                dout_p = y.shape[-1]
                if n_valid != dout_p:
                    # Padded lanes hold exact zeros (zero weight cols / bias);
                    # exclude them from the LayerNorm statistics.
                    lane = jax.lax.broadcasted_iota(jnp.int32, y.shape, 1)
                    mask = (lane < n_valid).astype(jnp.float32)
                    mean = jnp.sum(y * mask, axis=-1, keepdims=True) / n_valid
                    cent = (y - mean) * mask
                    var = jnp.sum(cent * cent, axis=-1, keepdims=True) / n_valid
                else:
                    mean = jnp.mean(y, axis=-1, keepdims=True)
                    cent = y - mean
                    var = jnp.mean(cent * cent, axis=-1, keepdims=True)
                y = (y - mean) * jax.lax.rsqrt(var + eps)
                y = y * gamma_ref[...] + beta_ref[...]

            if activation == "softplus":
                # Single-branch softplus == torch.nn.Softplus (diff < 3e-9 past
                # the threshold); one exp + one log1p per element on the EUP.
                y = jnp.maximum(y, 0.0) + jnp.log1p(jnp.exp(-jnp.abs(y)))
            else:  # relu
                y = jnp.maximum(y, 0.0)

            o_ref[...] = y.astype(o_ref.dtype)

    return kernel


def basic_block_forward(x, w, b, gamma=None, beta=None, *, norm=False,
                        activation="softplus", tm=256, tk=512,
                        matmul_dtype=None, eps=1e-5):
    """BasicBlock forward: act( layernorm?( x @ w.T + b ) ).

    x: [N, dim_in] f32; w: [dim_out, dim_in] (torch nn.Linear layout);
    b/gamma/beta: [dim_out].  matmul_dtype (e.g. jnp.bfloat16) only changes the
    MXU operand dtype; accumulation and the epilogue stay f32.
    """
    N, dim_in = x.shape
    dim_out, dim_in_w = w.shape
    assert dim_in_w == dim_in

    sublane = 16 if matmul_dtype == jnp.bfloat16 else 8

    # Lane-dense padding: features to multiples of 128, rows to the row tile.
    tk = max(128, _round_up(min(tk, _round_up(dim_in, 128)), 128))
    din_p = _round_up(dim_in, tk)          # K padded so tk divides it evenly
    dout_p = _round_up(dim_out, 128)       # lane-dense output slab
    tm = max(sublane, min(_round_up(tm, sublane), _round_up(N, sublane)))
    n_p = _round_up(N, tm)
    nk = din_p // tk

    mxu_dtype = matmul_dtype if matmul_dtype is not None else x.dtype

    x_p = jnp.zeros((n_p, din_p), mxu_dtype).at[:N, :dim_in].set(
        x.astype(mxu_dtype))
    wt_p = jnp.zeros((din_p, dout_p), mxu_dtype).at[:dim_in, :dim_out].set(
        jnp.transpose(w).astype(mxu_dtype))
    b_p = jnp.zeros((1, dout_p), jnp.float32).at[0, :dim_out].set(
        b.astype(jnp.float32))

    in_arrays = [x_p, wt_p, b_p]
    in_specs = [
        pl.BlockSpec((tm, tk), lambda i, k: (i, k)),        # x row/K tile
        pl.BlockSpec((tk, dout_p), lambda i, k: (k, 0)),    # W^T K tile (streamed)
        pl.BlockSpec((1, dout_p), lambda i, k: (0, 0)),     # bias
    ]
    if norm:
        assert gamma is not None and beta is not None
        g_p = jnp.zeros((1, dout_p), jnp.float32).at[0, :dim_out].set(
            gamma.astype(jnp.float32))
        be_p = jnp.zeros((1, dout_p), jnp.float32).at[0, :dim_out].set(
            beta.astype(jnp.float32))
        in_arrays += [g_p, be_p]
        in_specs += [
            pl.BlockSpec((1, dout_p), lambda i, k: (0, 0)),  # layernorm gamma
            pl.BlockSpec((1, dout_p), lambda i, k: (0, 0)),  # layernorm beta
        ]

    kernel = _make_basic_block_kernel(
        use_norm=norm, activation=activation, n_valid=dim_out, nk=nk, eps=eps)

    out = pl.pallas_call(
        kernel,
        out_shape=jax.ShapeDtypeStruct((n_p, dout_p), x.dtype),
        grid_spec=pltpu.PrefetchScalarGridSpec(
            num_scalar_prefetch=0,
            grid=(n_p // tm, nk),                     # reduction (K) axis last
            in_specs=in_specs,
            out_specs=pl.BlockSpec((tm, dout_p), lambda i, k: (i, 0)),
            scratch_shapes=[pltpu.VMEM((tm, dout_p), jnp.float32)],
        ),
        compiler_params=pltpu.CompilerParams(
            dimension_semantics=("parallel", "arbitrary"),
            vmem_limit_bytes=64 << 20,
        ),
    )(*in_arrays)

    return out[:N, :dim_out]


def basic_block_reference(x, w, b, gamma=None, beta=None, *, norm=False,
                          activation="softplus", eps=1e-5):
    y = x @ w.T + b
    if norm:
        mean = jnp.mean(y, axis=-1, keepdims=True)
        var = jnp.mean((y - mean) ** 2, axis=-1, keepdims=True)
        y = (y - mean) * jax.lax.rsqrt(var + eps)
        y = y * gamma + beta
    if activation == "softplus":
        y = jnp.where(y > 20.0, y, jnp.log1p(jnp.exp(jnp.minimum(y, 20.0))))
    else:
        y = jnp.maximum(y, 0.0)
    return y


if __name__ == "__main__":
    key = jax.random.PRNGKey(0)
    N, dim_in, dim_out = 16, 32, 32

    kx, kw, kb = jax.random.split(key, 3)
    x = jax.random.normal(kx, (N, dim_in), dtype=jnp.float32)

    # Deterministic PyTorch-style Linear init: U(-1/sqrt(dim_in), 1/sqrt(dim_in))
    bound = 1.0 / (dim_in ** 0.5)
    w = jax.random.uniform(kw, (dim_out, dim_in), minval=-bound, maxval=bound,
                           dtype=jnp.float32)
    b = jax.random.uniform(kb, (dim_out,), minval=-bound, maxval=bound,
                           dtype=jnp.float32)
    gamma = jnp.ones((dim_out,), jnp.float32)
    beta = jnp.zeros((dim_out,), jnp.float32)

    # Default BasicBlock config: norm=False, activation='softplus', f32 matmul.
    out = jax.block_until_ready(
        basic_block_forward(x, w, b, norm=False, activation="softplus"))
    ref = basic_block_reference(x, w, b, norm=False, activation="softplus")
    assert jnp.allclose(out, ref, atol=1e-5, rtol=1e-5), "mismatch vs reference"

    # norm=True + relu path (exercises masked LayerNorm over the padded lanes).
    out2 = jax.block_until_ready(
        basic_block_forward(x, w, b, gamma, beta, norm=True, activation="relu"))
    ref2 = basic_block_reference(x, w, b, gamma, beta, norm=True,
                                 activation="relu")
    assert jnp.allclose(out2, ref2, atol=1e-5, rtol=1e-5), "mismatch (norm)"

    # bf16 MXU operands (v6e/v7x fast path); f32 accumulation + f32 epilogue.
    out3 = jax.block_until_ready(
        basic_block_forward(x, w, b, norm=False, activation="softplus",
                            matmul_dtype=jnp.bfloat16))
    assert jnp.allclose(out3, ref, atol=1e-2, rtol=1e-2), "mismatch (bf16 matmul)"

    print("KERNEL_OK")
</pallas_src>

<mosaic_0001>
module attributes {stable_mosaic.version = 11 : i64} {
  func.func @kernel(%arg0: i32, %arg1: i32, %arg2: memref<16x128xf32, #tpu.memory_space<vmem>>, %arg3: memref<128x128xf32, #tpu.memory_space<vmem>>, %arg4: memref<1x128xf32, #tpu.memory_space<vmem>>, %arg5: memref<16x128xf32, #tpu.memory_space<vmem>>, %arg6: memref<16x128xf32, #tpu.memory_space<vmem>>) attributes {dimension_semantics = [#tpu.dimension_semantics<parallel>, #tpu.dimension_semantics<arbitrary>], iteration_bounds = array<i64: 1, 1>, scalar_prefetch = 0 : i64, scratch_operands = 1 : i64, tpu.core_type = #tpu.core_type<tc>, window_params = [{transform_indices = @transform_0, window_bounds = array<i64: 16, 128>}, {transform_indices = @transform_1, window_bounds = array<i64: 128, 128>}, {pipeline_mode = #tpu.pipeline_mode<synchronous>, transform_indices = @transform_2, window_bounds = array<i64: 1, 128>}, {transform_indices = @transform_3, window_bounds = array<i64: 16, 128>}]} {
    %c0_i32 = arith.constant 0 : i32
    %0 = arith.cmpi eq, %arg1, %c0_i32 : i32
    %1 = arith.extui %0 : i1 to i32
    %c0_i32_0 = arith.constant 0 : i32
    %2 = arith.cmpi ne, %1, %c0_i32_0 : i32
    scf.if %2 {
      %cst_10 = arith.constant 0.000000e+00 : f32
      %12 = vector.broadcast %cst_10 : f32 to vector<16x128xf32>
      %c0_11 = arith.constant 0 : index
      %c0_12 = arith.constant 0 : index
      %13 = vector.load %arg6[%c0_11, %c0_12] : memref<16x128xf32, #tpu.memory_space<vmem>>, vector<16x128xf32>
      tpu.vector_store %arg6[%c0_11, %c0_12], %12 {strides = array<i32>} : memref<16x128xf32, #tpu.memory_space<vmem>>, vector<16x128xf32>,
    } else {
    }
    %c0 = arith.constant 0 : index
    %c0_1 = arith.constant 0 : index
    %3 = vector.load %arg6[%c0, %c0_1] : memref<16x128xf32, #tpu.memory_space<vmem>>, vector<16x128xf32>
    %c0_2 = arith.constant 0 : index
    %c0_3 = arith.constant 0 : index
    %4 = vector.load %arg2[%c0_2, %c0_3] : memref<16x128xf32, #tpu.memory_space<vmem>>, vector<16x128xf32>
    %c0_4 = arith.constant 0 : index
    %c0_5 = arith.constant 0 : index
    %5 = vector.load %arg3[%c0_4, %c0_5] : memref<128x128xf32, #tpu.memory_space<vmem>>, vector<128x128xf32>
    %cst = arith.constant dense<0.000000e+00> : vector<16x128xf32>
    %6 = tpu.matmul %4, %5, %cst {dimension_numbers = #tpu.dot_dimension_numbers<[1], [0], [0], [1], [0, 0, 1, 1], [], []>} : vector<16x128xf32>, vector<128x128xf32>, vector<16x128xf32> -> vector<16x128xf32>
    %7 = arith.addf %3, %6 : vector<16x128xf32>
    %c0_6 = arith.constant 0 : index
    %c0_7 = arith.constant 0 : index
    %8 = vector.load %arg6[%c0_6, %c0_7] : memref<16x128xf32, #tpu.memory_space<vmem>>, vector<16x128xf32>
    tpu.vector_store %arg6[%c0_6, %c0_7], %7 {strides = array<i32>} : memref<16x128xf32, #tpu.memory_space<vmem>>, vector<16x128xf32>,
    %c0_i32_8 = arith.constant 0 : i32
    %9 = arith.cmpi eq, %arg1, %c0_i32_8 : i32
    %10 = arith.extui %9 : i1 to i32
    %c0_i32_9 = arith.constant 0 : i32
    %11 = arith.cmpi ne, %10, %c0_i32_9 : i32
    scf.if %11 {
      %c0_10 = arith.constant 0 : index
      %c0_11 = arith.constant 0 : index
      %12 = vector.load %arg6[%c0_10, %c0_11] : memref<16x128xf32, #tpu.memory_space<vmem>>, vector<16x128xf32>
      %c0_12 = arith.constant 0 : index
      %c0_13 = arith.constant 0 : index
      %13 = vector.load %arg4[%c0_12, %c0_13] : memref<1x128xf32, #tpu.memory_space<vmem>>, vector<1x128xf32>
      %14 = vector.broadcast %13 : vector<1x128xf32> to vector<16x128xf32>
      %15 = arith.addf %12, %14 : vector<16x128xf32>
      %cst_14 = arith.constant 0.000000e+00 : f32
      %16 = vector.broadcast %cst_14 : f32 to vector<16x128xf32>
      %17 = arith.maximumf %15, %16 : vector<16x128xf32>
      %18 = math.absf %15 : vector<16x128xf32>
      %cst_15 = arith.constant 0.000000e+00 : f32
      %19 = vector.broadcast %cst_15 : f32 to vector<16x128xf32>
      %20 = arith.subf %19, %18 : vector<16x128xf32>
      %21 = math.exp %20 : vector<16x128xf32>
      %22 = math.log1p %21 : vector<16x128xf32>
      %23 = arith.addf %17, %22 : vector<16x128xf32>
      %c0_16 = arith.constant 0 : index
      %c0_17 = arith.constant 0 : index
      %24 = vector.load %arg5[%c0_16, %c0_17] : memref<16x128xf32, #tpu.memory_space<vmem>>, vector<16x128xf32>
      tpu.vector_store %arg5[%c0_16, %c0_17], %23 {strides = array<i32>} : memref<16x128xf32, #tpu.memory_space<vmem>>, vector<16x128xf32>,
    } else {
    }
    return
  }
  func.func @transform_0(%arg0: i32, %arg1: i32) -> (i32, i32) {
    %c0_i32 = arith.constant 0 : i32
    return %arg0, %arg1 : i32, i32
  }
  func.func @transform_1(%arg0: i32, %arg1: i32) -> (i32, i32) {
    %c0_i32 = arith.constant 0 : i32
    %c0_i32_0 = arith.constant 0 : i32
    return %arg1, %c0_i32 : i32, i32
  }
  func.func @transform_2(%arg0: i32, %arg1: i32) -> (i32, i32) {
    %c0_i32 = arith.constant 0 : i32
    %c0_i32_0 = arith.constant 0 : i32
    %c0_i32_1 = arith.constant 0 : i32
    return %c0_i32, %c0_i32_0 : i32, i32
  }
  func.func @transform_3(%arg0: i32, %arg1: i32) -> (i32, i32) {
    %c0_i32 = arith.constant 0 : i32
    %c0_i32_0 = arith.constant 0 : i32
    return %arg0, %c0_i32 : i32, i32
  }
}

</mosaic_0001>

<bundles_post_ra>
// kernel: tpu_custom_call.1
= control target key start
LH: loop header
LB: loop body
LE: loop exit
PB: predicated region body
PF: predicated region fallthrough
CT: control target
= control target key end

     0   :  { %8 = vsyncpa [#allocation4], 0  ;;  %s391_s0 = inlined_call_operand.hbm [shape: f32[16,128], index: 0, kind: input, shape index: {}]   ;;  %s392_s1 = inlined_call_operand.hbm [shape: f32[128,128], index: 1, kind: input, shape index: {}]   ;;  %s393_s2 = inlined_call_operand.vmem [shape: f32[1,128], index: 2, kind: input, shape index: {}]   ;;  %s394_s3 = inlined_call_operand.hbm [shape: f32[16,128], index: 3, kind: output, shape index: {}]  }
   0x1   :  { %9 = vsyncpa [#allocation7], 0 }
   0x2   :  { %10 = vsyncpa [#allocation5], 0  ;;  %s345_s12 = smov [#allocation3]  }
   0x3   :  { %s16_s13 = sshll.u32 %s345_s12, 4  ;;  %s17_s13 = int_to_ptr.vmem [resolvable:$true] %s16_s13 }
   0x4   :  { %s287_s14 = scalar_lea.vmem %s17_s13, 256  ;;  %p292_p1 = scmp.lt.s32.totalorder %s17_s13, %s17_s13 }
   0x5   :  { %p288_p0 = scmp.ne.s32.totalorder %s17_s13, %s287_s14  ;;  %p293_p2 = scmp.lt.s32.totalorder %s287_s14, %s287_s14 }
   0x7   :  { %p294_p3 = por %p293_p2, %p292_p1 }
   0x9   :  { %p295_p4 = pnand %p294_p3, %p288_p0 }
   0xb   :  { %298 = shalt.err (!%p295_p4)
}
   0xc   :  { %s346_s15 = smov 128   ;;  %s347_s16 = smov 8  }
   0xd   :  { %22 = dma.hbm_to_vmem [thread:$0]  %s391_s0, 256, %s17_s13, [#allocation4], %s346_s15, %s346_s15, %s347_s16  }
   0xe   :  { %s348_s19 = smov [#allocation6]  }
   0xf   :  { %s28_s20 = sshll.u32 %s348_s19, 4  ;;  %s29_s20 = int_to_ptr.vmem [resolvable:$true] %s28_s20 }
  0x10   :  { %s307_s21 = scalar_lea.vmem %s29_s20, 2048  ;;  %p312_p6 = scmp.lt.s32.totalorder %s29_s20, %s29_s20 }
  0x11   :  { %p308_p5 = scmp.ne.s32.totalorder %s29_s20, %s307_s21  ;;  %p313_p7 = scmp.lt.s32.totalorder %s307_s21, %s307_s21 }
  0x13   :  { %p314_p8 = por %p313_p7, %p312_p6 }
  0x15   :  { %p315_p9 = pnand %p314_p8, %p308_p5 }
  0x17   :  { %318 = shalt.err (!%p315_p9)
}
  0x18   :  { %34 = dma.hbm_to_vmem [thread:$0]  %s392_s1, 2048, %s29_s20, [#allocation7], %s346_s15, %s346_s15, %s347_s16  }
  0x19   :  { %339 = dma.done.wait [#allocation4], 256  }
  0x1a   :  { %340 = vsyncadd [#allocation4], 4294967040 }
  0x1b   :  { %341 = dma.done.wait [#allocation7], 2048  }
  0x1c   :  { %342 = vsyncadd [#allocation7], 4294965248  ;;  %v68_v0 = vld [vmem:[#allocation6 + $0x78] sm:$0xff]  ;;  %v67_v1 = vld [vmem:[#allocation6 + $0x70] sm:$0xff] }
  0x1d   :  { %231 = vmatprep.subr.mxu0 %v68_v0  ;;  %v66_v2 = vld [vmem:[#allocation6 + $0x68] sm:$0xff]  ;;  %v65_v3 = vld [vmem:[#allocation6 + $0x60] sm:$0xff]  ;;  %v51_v4 = vld [vmem:[#allocation3] sm:$0xff] }
  0x1e   :  { %232 = vmatpush3.msra.mxu0 %v68_v0  ;;  %v64_v5 = vld [vmem:[#allocation6 + $0x58] sm:$0xff]  ;;  %263 = vmatprep.mubr.f32.mxu0 %v51_v4  ;;  %v63_v6 = vld [vmem:[#allocation6 + $0x50] sm:$0xff]  ;;  %v62_v7 = vld [vmem:[#allocation6 + $0x48] sm:$0xff] }
  0x1f   :  { %233 = vmatprep.subr.mxu0 %v67_v1  ;;  %v61_v8 = vld [vmem:[#allocation6 + $0x40] sm:$0xff]  ;;  %v60_v9 = vld [vmem:[#allocation6 + $0x38] sm:$0xff]  ;;  %v59_v10 = vld [vmem:[#allocation6 + $0x30] sm:$0xff] }
  0x20   :  { %234 = vmatpush3.msra.mxu0 %v67_v1  ;;  %v58_v11 = vld [vmem:[#allocation6 + $0x28] sm:$0xff]  ;;  %v57_v12 = vld [vmem:[#allocation6 + $0x20] sm:$0xff]  ;;  %v56_v13 = vld [vmem:[#allocation6 + $0x18] sm:$0xff] }
  0x21   :  { %235 = vmatprep.subr.mxu0 %v66_v2  ;;  %v55_v14 = vld [vmem:[#allocation6 + $0x10] sm:$0xff]  ;;  %v54_v15 = vld [vmem:[#allocation6 + $0x8] sm:$0xff]  ;;  %v53_v16 = vld [vmem:[#allocation6] sm:$0xff] }
  0x22   :  { %236 = vmatpush3.msra.mxu0 %v66_v2  ;;  %v52_v17 = vld [vmem:[#allocation3 + $0x8] sm:$0xff]  ;;  %v212_v18 = vld [vmem:[%s393_s2] ss:$0 sm:$0xff]  ;;  %s349_s2 = smov [#allocation8]  }
  0x23   :  { %237 = vmatprep.subr.mxu0 %v65_v3  ;;  %s199_s24 = sshll.u32 %s349_s2, 4  ;;  %s200_s24 = int_to_ptr.vmem [resolvable:$true] %s199_s24 }
  0x24   :  { %238 = vmatpush3.msra.mxu0 %v65_v3  ;;  %s319_s25 = scalar_lea.vmem %s200_s24, 256  ;;  %p324_p11 = scmp.lt.s32.totalorder %s200_s24, %s200_s24 }
  0x25   :  { %239 = vmatprep.subr.mxu0 %v64_v5  ;;  %p320_p10 = scmp.ne.s32.totalorder %s200_s24, %s319_s25  ;;  %p325_p12 = scmp.lt.s32.totalorder %s319_s25, %s319_s25 }
  0x26   :  { %240 = vmatpush3.msra.mxu0 %v64_v5 }
  0x27   :  { %241 = vmatprep.subr.mxu0 %v63_v6  ;;  %p326_p13 = por %p325_p12, %p324_p11 }
  0x28   :  { %242 = vmatpush3.msra.mxu0 %v63_v6 }
  0x29   :  { %243 = vmatprep.subr.mxu0 %v62_v7  ;;  %p327_p0 = pnand %p326_p13, %p320_p10 }
  0x2a   :  { %244 = vmatpush3.msra.mxu0 %v62_v7 }
  0x2b   :  { %245 = vmatprep.subr.mxu0 %v61_v8 }
  0x2c   :  { %246 = vmatpush3.msra.mxu0 %v61_v8 }
  0x2d   :  { %247 = vmatprep.subr.mxu0 %v60_v9 }
  0x2e   :  { %248 = vmatpush3.msra.mxu0 %v60_v9 }
  0x2f   :  { %249 = vmatprep.subr.mxu0 %v59_v10 }
  0x30   :  { %250 = vmatpush3.msra.mxu0 %v59_v10 }
  0x31   :  { %251 = vmatprep.subr.mxu0 %v58_v11 }
  0x32   :  { %252 = vmatpush3.msra.mxu0 %v58_v11 }
  0x33   :  { %253 = vmatprep.subr.mxu0 %v57_v12 }
  0x34   :  { %254 = vmatpush3.msra.mxu0 %v57_v12 }
  0x35   :  { %255 = vmatprep.subr.mxu0 %v56_v13 }
  0x36   :  { %256 = vmatpush3.msra.mxu0 %v56_v13 }
  0x37   :  { %257 = vmatprep.subr.mxu0 %v55_v14 }
  0x38   :  { %258 = vmatpush3.msra.mxu0 %v55_v14 }
  0x39   :  { %259 = vmatprep.subr.mxu0 %v54_v15 }
  0x3a   :  { %260 = vmatpush3.msra.mxu0 %v54_v15 }
  0x3b   :  { %261 = vmatprep.subr.mxu0 %v53_v16 }
  0x3c   :  { %262 = vmatpush3.msra.mxu0 %v53_v16 }
  0x3d   :  { %264 = vmatmul.mubr.f32.vlgmr.msra.gmra.mxu0 %v52_v17 }
  0xfd   :  { %v265_v19 = vpop.f32.mrf.mxu0 }
  0xfe   :  { %v161_v20 = vadd.f32 %v265_v19, %v212_v18 }
  0xff   :  { %v135_v21 = vpop.f32.mrf.mxu0 }
 0x100   :  { %v165_v22 = vand.u32 2147483647, %v161_v20  ;;  %v160_v23 = vadd.f32 %v212_v18, %v135_v21  ;;  %v163_v43 = vmax.f32 %v161_v20, 0.0 }
 0x102   :  { %v167_v24 = vsub.f32 0.0, %v165_v22  ;;  %v164_v25 = vand.u32 2147483647, %v160_v23  ;;  %v162_v48 = vmax.f32 %v160_v23, 0.0 }
 0x104   :  { %v170_v26 = vmul.f32 1.442695, %v167_v24  ;;  %v166_v27 = vsub.f32 0.0, %v164_v25 }
 0x106   :  { %271 = vpow2.f32 %v170_v26  ;;  %v168_v28 = vmul.f32 1.442695, %v166_v27 }
 0x108   :  { %273 = vpow2.f32 %v168_v28 }
 0x113   :  { %v272_v29 = vpop.eup %271 }
 0x114   :  { %v181_v30 = vadd.f32 1.0, %v272_v29  ;;  %v184_v33 = vmul.f32 -0.5, %v272_v29  ;;  %v187_v36 = vand.u32 2147483647, %v272_v29 }
 0x115   :  { %v274_v31 = vpop.eup %273 }
 0x116   :  { %275 = vlog2.f32 %v181_v30  ;;  %v172_v32 = vadd.f32 1.0, %v274_v31  ;;  %v175_v34 = vmul.f32 -0.5, %v274_v31  ;;  %v185_v35 = vadd.f32 1.0, %v184_v33 }
 0x117   :  { %v178_v39 = vand.u32 2147483647, %v274_v31  ;;  %vm188_vm0 = vcmp.lt.f32.partialorder %v187_v36, 0.0004427343 }
 0x118   :  { %277 = vlog2.f32 %v172_v32  ;;  %v176_v37 = vadd.f32 1.0, %v175_v34  ;;  %v186_v41 = vmul.f32 %v272_v29, %v185_v35 }
 0x119   :  { %vm179_vm1 = vcmp.lt.f32.partialorder %v178_v39, 0.0004427343 }
 0x11a   :  { %v177_v46 = vmul.f32 %v274_v31, %v176_v37 }
 0x123   :  { %v276_v38 = vpop.eup %275 }
 0x124   :  { %v183_v40 = vmul.f32 0.6931472, %v276_v38 }
 0x125   :  { %v278_v42 = vpop.eup %277 }
 0x126   :  { %v189_v44 = vsel %vm188_vm0, %v186_v41, %v183_v40  ;;  %v174_v45 = vmul.f32 0.6931472, %v278_v42 }
 0x127   :  { %v191_v47 = vadd.f32 %v189_v44, %v163_v43 }
 0x128   :  { %v180_v49 = vsel %vm179_vm1, %v177_v46, %v174_v45 }
 0x129   :  { %193 = vst [vmem:[#allocation8 + $0x8] sm:$0xff] %v191_v47  ;;  %v190_v50 = vadd.f32 %v180_v49, %v162_v48 }
 0x12b   :  { %192 = vst [vmem:[#allocation8] sm:$0xff] %v190_v50 }
 0x12c   :  { %330 = shalt.err (!%p327_p0)
}
 0x12d   :  { %205 = dma.vmem_to_hbm [thread:$0]  %s200_s24, 256, %s394_s3, [#allocation5], %s346_s15, %s346_s15, %s347_s16  }
 0x12e   :  { %343 = dma.done.wait [#allocation5], 256  }
 0x12f   :  { %344 = vsyncadd [#allocation5], 4294967040 }
 0x130   :  { %209 = vsyncpa [#allocation4], 1 }
 0x131   :  { %210 = vsyncpa [#allocation7], 1 }
 0x132   :  { %211 = vsyncpa [#allocation5], 1 }

</bundles_post_ra>
